<compile_context>
chip_gen: v6e
topology: v6e:2x2x1
jax: 0.10.0
libtpu: 0.0.40
codegen_flags: <defaults>
</compile_context>

<pallas_src>
import functools

import jax
import jax.numpy as jnp
from jax import lax
from jax.experimental import pallas as pl
from jax.experimental.pallas import tpu as pltpu


def _uniform_bits(seed_u32, row0_u32, col0_u32, shape):
    """Stateless per-element uint32 hash (lowbias32-style finalizer).

    Portable replacement for the TPU hardware PRNG: pure VPU integer ops, so it lowers on
    real TPUs and on the interpret/CPU fallback. Mixing the *global* element position with
    the seed decorrelates dropout masks across tiles and across consecutive step seeds.
    """
    r = lax.broadcasted_iota(jnp.uint32, shape, 0) + row0_u32
    c = lax.broadcasted_iota(jnp.uint32, shape, 1) + col0_u32
    v = (r * jnp.uint32(0x9E3779B1)) ^ (c * jnp.uint32(0x85EBCA77))
    v = v + seed_u32 * jnp.uint32(0xC2B2AE3D)
    v = v ^ (v >> 16)
    v = v * jnp.uint32(0x7FEB352D)
    v = v ^ (v >> 15)
    v = v * jnp.uint32(0x846CA68B)
    v = v ^ (v >> 16)
    return v


def _ffn_kernel(seed_ref, x_ref, w1_ref, b1_ref, w2_ref, b2_ref, o_ref,
                *, chunk, drop_prob, training):
    tm, d_model = x_ref.shape
    hidden = w1_ref.shape[1]
    n_chunks = hidden // chunk

    use_dropout = bool(training) and drop_prob > 0.0
    if use_dropout:
        # 24-bit threshold -> signed int32 compare (keep-prob error <= 2^-24).
        thresh24 = jnp.int32(min(int(round(drop_prob * float(1 << 24))), (1 << 24) - 1))
        inv_keep = 1.0 / (1.0 - drop_prob)
        seed_u32 = jnp.asarray(seed_ref[0], jnp.uint32)
        row0 = jnp.asarray(pl.program_id(0), jnp.uint32) * jnp.uint32(tm)

    def chunk_step(c, acc):
        off = c * chunk
        if not isinstance(off, int):
            off = pl.multiple_of(off, chunk)
        # linear1 on a hidden-chunk: [tm, d_model] @ [d_model, chunk] on the MXU (f32 acc).
        h = jnp.dot(x_ref[...], w1_ref[:, pl.ds(off, chunk)],
                    preferred_element_type=jnp.float32)
        h = jnp.maximum(h + b1_ref[:, pl.ds(off, chunk)].astype(jnp.float32), 0.0)
        # Cast to the storage dtype *before* dropout: bf16 select/scale halves VALU work on
        # v6e/v7x and feeds matmul-2 at the bf16 MXU rate (f32 accumulation preserved).
        h = h.astype(x_ref.dtype)
        if use_dropout:
            col0 = jnp.asarray(c, jnp.uint32) * jnp.uint32(chunk)
            bits = _uniform_bits(seed_u32, row0, col0, (tm, chunk))
            keep = (bits >> 8).astype(jnp.int32) >= thresh24
            h = jnp.where(keep, h, jnp.zeros_like(h)) * jnp.asarray(inv_keep, h.dtype)
        # linear2 partial product: [tm, chunk] @ [chunk, d_model], accumulate in f32.
        return acc + jnp.dot(h, w2_ref[pl.ds(off, chunk), :],
                             preferred_element_type=jnp.float32)

    acc = jnp.zeros((tm, d_model), jnp.float32)
    if n_chunks <= 4:
        for ci in range(n_chunks):          # short: static unroll, constant slice offsets
            acc = chunk_step(ci, acc)
    else:
        acc = lax.fori_loop(0, n_chunks, chunk_step, acc)

    o_ref[...] = (acc + b2_ref[...].astype(jnp.float32)).astype(o_ref.dtype)


def _pick_chunk(hidden):
    if hidden <= 1024:
        return hidden
    for c in (1024, 512, 256, 128):
        if hidden % c == 0:
            return c
    return hidden


def positionwise_feed_forward(x, w1, b1, w2, b2, *, drop_prob=0.01,
                              training=False, seed=0, block_m=None):
    """x: [..., d_model]; w1: [d_model, hidden]; w2: [hidden, d_model] (pre-transposed vs torch).

    For best MXU utilisation keep d_model / hidden multiples of 128 (v5e) or 256 (v6e/v7x).
    """
    orig_shape = x.shape
    d_model = orig_shape[-1]
    hidden = w1.shape[1]

    x2 = x.reshape(-1, d_model)
    M = x2.shape[0]
    itemsize = jnp.dtype(x.dtype).itemsize

    try:
        vmem_cap = int(pltpu.get_tpu_info().vmem_capacity_bytes)
    except Exception:
        vmem_cap = 128 << 20
    small_vmem = vmem_cap <= (64 << 20)        # v7x-class TensorCore (64 MiB VMEM, 2 TCs)

    if block_m is None:
        block_m = 256 if small_vmem else 512
    block_m = max(8, (int(block_m) // 8) * 8)

    # Row tile: full extent if one block suffices (always layout-legal), else a multiple of
    # 8 sublanes; the partial edge block is masked by Pallas, so no wrapper pad / out-slice.
    tm = M if M <= block_m else block_m
    # On 2-TC chips make sure the 1-D "parallel" grid has at least 2 steps for decent M.
    if small_vmem and M >= 256 and pl.cdiv(M, tm) < 2:
        tm = max(8, (pl.cdiv(M, 2) + 7) // 8 * 8)
    grid_m = pl.cdiv(M, tm)

    chunk = _pick_chunk(hidden)

    kernel = functools.partial(_ffn_kernel, chunk=chunk,
                               drop_prob=float(drop_prob), training=bool(training))

    flops = 4 * M * d_model * hidden                      # two matmuls, 2*M*K*N each
    bytes_accessed = (2 * M * d_model + 2 * d_model * hidden
                      + hidden + d_model) * itemsize
    out_shape = jax.ShapeDtypeStruct((M, d_model), x.dtype)
    args = (jnp.asarray([seed], dtype=jnp.int32), x2, w1,
            b1.reshape(1, hidden), w2, b2.reshape(1, d_model))

    def build(single_buffer_weights):
        # VMEM accounting: weights (x1 if single-buffered, x2 otherwise), double-buffered
        # x/out tiles, f32 accumulator, per-chunk f32 h + storage-dtype h (+ uint32 hash
        # bits when dropout is live), plus headroom; capped at ~75% of this chip's VMEM.
        wfac = 1 if single_buffer_weights else 2
        weight_bytes = (2 * d_model * hidden + hidden + d_model) * itemsize * wfac
        io_bytes = 2 * 2 * tm * d_model * itemsize
        acc_bytes = tm * d_model * 4
        h_bytes = tm * chunk * (4 + itemsize)
        if training and drop_prob > 0.0:
            h_bytes += tm * chunk * 4
        need = weight_bytes + io_bytes + acc_bytes + h_bytes + (4 << 20)
        vmem_limit = int(min(max(need, 16 << 20), int(vmem_cap * 0.75)))

        # Constant-index weights/biases stay VMEM-resident for the whole grid; single-buffer
        # them so the pipeline doesn't allocate a useless second copy.
        wmode = {"pipeline_mode": pl.Buffered(1)} if single_buffer_weights else {}
        in_specs = [
            pl.BlockSpec((tm, d_model), lambda i, s: (i, 0)),
            pl.BlockSpec((d_model, hidden), lambda i, s: (0, 0), **wmode),
            pl.BlockSpec((1, hidden), lambda i, s: (0, 0), **wmode),
            pl.BlockSpec((hidden, d_model), lambda i, s: (0, 0), **wmode),
            pl.BlockSpec((1, d_model), lambda i, s: (0, 0), **wmode),
        ]
        # TODO(synk): for FFN widths whose weights cannot stay VMEM-resident, add a second
        # "arbitrary" grid axis streaming hidden-chunks of w1/w2 into an f32 accumulator.
        return pl.pallas_call(
            kernel,
            out_shape=out_shape,
            grid_spec=pltpu.PrefetchScalarGridSpec(
                num_scalar_prefetch=1,
                grid=(grid_m,),
                in_specs=in_specs,
                out_specs=pl.BlockSpec((tm, d_model), lambda i, s: (i, 0)),
            ),
            compiler_params=pltpu.CompilerParams(
                dimension_semantics=("parallel",),
                vmem_limit_bytes=vmem_limit),
            cost_estimate=pl.CostEstimate(flops=flops, transcendentals=0,
                                          bytes_accessed=bytes_accessed),
        )

    try:
        out = build(single_buffer_weights=True)(*args)
    except Exception:
        # pl.Buffered(1) not accepted by this runtime/backend: default double-buffering.
        out = build(single_buffer_weights=False)(*args)

    return out.reshape(orig_shape)


def init_params(key, d_model, hidden, dtype=jnp.float32):
    """Init mirroring torch.nn.Linear: U(-1/sqrt(fan_in), 1/sqrt(fan_in))."""
    k1, k2, k3, k4 = jax.random.split(key, 4)
    bound1 = 1.0 / (d_model ** 0.5)
    bound2 = 1.0 / (hidden ** 0.5)
    # stored as [in, out] (transposed relative to torch's [out, in])
    w1 = jax.random.uniform(k1, (d_model, hidden), dtype, -bound1, bound1)
    b1 = jax.random.uniform(k2, (hidden,), dtype, -bound1, bound1)
    w2 = jax.random.uniform(k3, (hidden, d_model), dtype, -bound2, bound2)
    b2 = jax.random.uniform(k4, (d_model,), dtype, -bound2, bound2)
    return w1, b1, w2, b2


if __name__ == "__main__":
    # Small but lane-aligned shapes (feature axes are multiples of 128).
    batch, seq, d_model, hidden = 2, 8, 128, 256

    key = jax.random.PRNGKey(0)
    kx, kp = jax.random.split(key)
    x = jax.random.normal(kx, (batch, seq, d_model), jnp.float32)
    w1, b1, w2, b2 = init_params(kp, d_model, hidden)
    hp = jax.lax.Precision.HIGHEST

    # --- f32, eval mode: correctness vs pure-JAX reference ---
    out = jax.block_until_ready(
        positionwise_feed_forward(x, w1, b1, w2, b2, drop_prob=0.01, training=False))
    h_ref = jnp.maximum(jnp.dot(x, w1, precision=hp) + b1, 0.0)
    ref = jnp.dot(h_ref, w2, precision=hp) + b2
    assert out.shape == x.shape
    assert jnp.allclose(out, ref, atol=2e-4, rtol=2e-4), "f32 mismatch vs reference"

    # --- bf16, eval mode: exercises the bf16 MXU path (f32 accumulation) ---
    xb, w1b, b1b, w2b, b2b = (a.astype(jnp.bfloat16) for a in (x, w1, b1, w2, b2))
    out_bf16 = jax.block_until_ready(
        positionwise_feed_forward(xb, w1b, b1b, w2b, b2b, drop_prob=0.01, training=False))
    h_ref_b = jnp.maximum(jnp.dot(xb.astype(jnp.float32), w1b.astype(jnp.float32),
                                  precision=hp) + b1b.astype(jnp.float32), 0.0)
    ref_b = jnp.dot(h_ref_b, w2b.astype(jnp.float32), precision=hp) + b2b.astype(jnp.float32)
    assert out_bf16.shape == x.shape
    assert float(jnp.max(jnp.abs(out_bf16.astype(jnp.float32) - ref_b))) < 5e-2, \
        "bf16 mismatch vs reference"

    # --- training mode: exercises the hash-based dropout path ---
    # TODO(synk): the dropout mask cannot bitwise-match torch's RNG stream; semantics
    # (zero with prob p, scale kept values by 1/(1-p)) are identical.
    out_train = jax.block_until_ready(
        positionwise_feed_forward(x, w1, b1, w2, b2, drop_prob=0.1,
                                  training=True, seed=1234))
    assert out_train.shape == x.shape
    assert bool(jnp.all(jnp.isfinite(out_train))), "non-finite training-mode output"

    print("KERNEL_OK")
</pallas_src>

<mosaic_0001>
module attributes {stable_mosaic.version = 11 : i64} {
  func.func @_ffn_kernel(%arg0: i32, %arg1: memref<1xi32, #tpu.memory_space<smem>>, %arg2: memref<16x128xf32, #tpu.memory_space<vmem>>, %arg3: memref<128x256xf32, #tpu.memory_space<vmem>>, %arg4: memref<1x256xf32, #tpu.memory_space<vmem>>, %arg5: memref<256x128xf32, #tpu.memory_space<vmem>>, %arg6: memref<1x128xf32, #tpu.memory_space<vmem>>, %arg7: memref<16x128xf32, #tpu.memory_space<vmem>>) attributes {dimension_semantics = [#tpu.dimension_semantics<parallel>], iteration_bounds = array<i64: 1>, scalar_prefetch = 1 : i64, scratch_operands = 0 : i64, tpu.core_type = #tpu.core_type<tc>, window_params = [{transform_indices = @transform_0, window_bounds = array<i64: 16, 128>}, {pipeline_mode = #tpu.pipeline_mode<synchronous>, transform_indices = @transform_1, window_bounds = array<i64: 128, 256>}, {pipeline_mode = #tpu.pipeline_mode<synchronous>, transform_indices = @transform_2, window_bounds = array<i64: 1, 256>}, {pipeline_mode = #tpu.pipeline_mode<synchronous>, transform_indices = @transform_3, window_bounds = array<i64: 256, 128>}, {pipeline_mode = #tpu.pipeline_mode<synchronous>, transform_indices = @transform_4, window_bounds = array<i64: 1, 128>}, {transform_indices = @transform_5, window_bounds = array<i64: 16, 128>}]} {
    %cst = arith.constant 0.000000e+00 : f32
    %0 = vector.broadcast %cst : f32 to vector<16x128xf32>
    %c0 = arith.constant 0 : index
    %c0_0 = arith.constant 0 : index
    %1 = vector.load %arg2[%c0, %c0_0] : memref<16x128xf32, #tpu.memory_space<vmem>>, vector<16x128xf32>
    %c0_1 = arith.constant 0 : index
    %c0_2 = arith.constant 0 : index
    %2 = vector.load %arg3[%c0_1, %c0_2] : memref<128x256xf32, #tpu.memory_space<vmem>>, vector<128x256xf32>
    %cst_3 = arith.constant dense<0.000000e+00> : vector<16x256xf32>
    %3 = tpu.matmul %1, %2, %cst_3 {dimension_numbers = #tpu.dot_dimension_numbers<[1], [0], [0], [1], [0, 0, 1, 1], [], []>} : vector<16x128xf32>, vector<128x256xf32>, vector<16x256xf32> -> vector<16x256xf32>
    %c0_4 = arith.constant 0 : index
    %c0_5 = arith.constant 0 : index
    %4 = vector.load %arg4[%c0_4, %c0_5] : memref<1x256xf32, #tpu.memory_space<vmem>>, vector<1x256xf32>
    %5 = vector.broadcast %4 : vector<1x256xf32> to vector<16x256xf32>
    %6 = arith.addf %3, %5 : vector<16x256xf32>
    %cst_6 = arith.constant 0.000000e+00 : f32
    %7 = vector.broadcast %cst_6 : f32 to vector<16x256xf32>
    %8 = arith.maximumf %6, %7 : vector<16x256xf32>
    %c0_7 = arith.constant 0 : index
    %c0_8 = arith.constant 0 : index
    %9 = vector.load %arg5[%c0_7, %c0_8] : memref<256x128xf32, #tpu.memory_space<vmem>>, vector<256x128xf32>
    %cst_9 = arith.constant dense<0.000000e+00> : vector<16x128xf32>
    %10 = tpu.matmul %8, %9, %cst_9 {dimension_numbers = #tpu.dot_dimension_numbers<[1], [0], [0], [1], [0, 0, 1, 1], [], []>} : vector<16x256xf32>, vector<256x128xf32>, vector<16x128xf32> -> vector<16x128xf32>
    %11 = arith.addf %0, %10 : vector<16x128xf32>
    %c0_10 = arith.constant 0 : index
    %c0_11 = arith.constant 0 : index
    %12 = vector.load %arg6[%c0_10, %c0_11] : memref<1x128xf32, #tpu.memory_space<vmem>>, vector<1x128xf32>
    %13 = vector.broadcast %12 : vector<1x128xf32> to vector<16x128xf32>
    %14 = arith.addf %11, %13 : vector<16x128xf32>
    %c0_12 = arith.constant 0 : index
    %c0_13 = arith.constant 0 : index
    %15 = vector.load %arg7[%c0_12, %c0_13] : memref<16x128xf32, #tpu.memory_space<vmem>>, vector<16x128xf32>
    tpu.vector_store %arg7[%c0_12, %c0_13], %14 {strides = array<i32>} : memref<16x128xf32, #tpu.memory_space<vmem>>, vector<16x128xf32>,
    return
  }
  func.func @transform_0(%arg0: i32, %arg1: memref<1xi32, #tpu.memory_space<smem>>) -> (i32, i32) {
    %c0_i32 = arith.constant 0 : i32
    %c0_i32_0 = arith.constant 0 : i32
    return %arg0, %c0_i32 : i32, i32
  }
  func.func @transform_1(%arg0: i32, %arg1: memref<1xi32, #tpu.memory_space<smem>>) -> (i32, i32) {
    %c0_i32 = arith.constant 0 : i32
    %c0_i32_0 = arith.constant 0 : i32
    %c0_i32_1 = arith.constant 0 : i32
    return %c0_i32, %c0_i32_0 : i32, i32
  }
  func.func @transform_2(%arg0: i32, %arg1: memref<1xi32, #tpu.memory_space<smem>>) -> (i32, i32) {
    %c0_i32 = arith.constant 0 : i32
    %c0_i32_0 = arith.constant 0 : i32
    %c0_i32_1 = arith.constant 0 : i32
    return %c0_i32, %c0_i32_0 : i32, i32
  }
  func.func @transform_3(%arg0: i32, %arg1: memref<1xi32, #tpu.memory_space<smem>>) -> (i32, i32) {
    %c0_i32 = arith.constant 0 : i32
    %c0_i32_0 = arith.constant 0 : i32
    %c0_i32_1 = arith.constant 0 : i32
    return %c0_i32, %c0_i32_0 : i32, i32
  }
  func.func @transform_4(%arg0: i32, %arg1: memref<1xi32, #tpu.memory_space<smem>>) -> (i32, i32) {
    %c0_i32 = arith.constant 0 : i32
    %c0_i32_0 = arith.constant 0 : i32
    %c0_i32_1 = arith.constant 0 : i32
    return %c0_i32, %c0_i32_0 : i32, i32
  }
  func.func @transform_5(%arg0: i32, %arg1: memref<1xi32, #tpu.memory_space<smem>>) -> (i32, i32) {
    %c0_i32 = arith.constant 0 : i32
    %c0_i32_0 = arith.constant 0 : i32
    return %arg0, %c0_i32 : i32, i32
  }
}

module attributes {stable_mosaic.version = 11 : i64} {
  func.func @_ffn_kernel(%arg0: i32, %arg1: memref<1xi32, #tpu.memory_space<smem>>, %arg2: memref<16x128xf32, #tpu.memory_space<vmem>>, %arg3: memref<128x256xf32, #tpu.memory_space<vmem>>, %arg4: memref<1x256xf32, #tpu.memory_space<vmem>>, %arg5: memref<256x128xf32, #tpu.memory_space<vmem>>, %arg6: memref<1x128xf32, #tpu.memory_space<vmem>>, %arg7: memref<16x128xf32, #tpu.memory_space<vmem>>) attributes {dimension_semantics = [#tpu.dimension_semantics<parallel>], iteration_bounds = array<i64: 1>, scalar_prefetch = 1 : i64, scratch_operands = 0 : i64, tpu.core_type = #tpu.core_type<tc>, window_params = [{transform_indices = @transform_0, window_bounds = array<i64: 16, 128>}, {pipeline_mode = #tpu.pipeline_mode<synchronous>, transform_indices = @transform_1, window_bounds = array<i64: 128, 256>}, {pipeline_mode = #tpu.pipeline_mode<synchronous>, transform_indices = @transform_2, window_bounds = array<i64: 1, 256>}, {pipeline_mode = #tpu.pipeline_mode<synchronous>, transform_indices = @transform_3, window_bounds = array<i64: 256, 128>}, {pipeline_mode = #tpu.pipeline_mode<synchronous>, transform_indices = @transform_4, window_bounds = array<i64: 1, 128>}, {transform_indices = @transform_5, window_bounds = array<i64: 16, 128>}]} {
    %cst = arith.constant 0.000000e+00 : f32
    %0 = vector.broadcast %cst : f32 to vector<16x128xf32>
    %c0 = arith.constant 0 : index
    %c0_0 = arith.constant 0 : index
    %1 = vector.load %arg2[%c0, %c0_0] : memref<16x128xf32, #tpu.memory_space<vmem>>, vector<16x128xf32>
    %c0_1 = arith.constant 0 : index
    %c0_2 = arith.constant 0 : index
    %2 = vector.load %arg3[%c0_1, %c0_2] : memref<128x256xf32, #tpu.memory_space<vmem>>, vector<128x256xf32>
    %cst_3 = arith.constant dense<0.000000e+00> : vector<16x256xf32>
    %3 = tpu.matmul %1, %2, %cst_3 {dimension_numbers = #tpu.dot_dimension_numbers<[1], [0], [0], [1], [0, 0, 1, 1], [], []>} : vector<16x128xf32>, vector<128x256xf32>, vector<16x256xf32> -> vector<16x256xf32>
    %c0_4 = arith.constant 0 : index
    %c0_5 = arith.constant 0 : index
    %4 = vector.load %arg4[%c0_4, %c0_5] : memref<1x256xf32, #tpu.memory_space<vmem>>, vector<1x256xf32>
    %5 = vector.broadcast %4 : vector<1x256xf32> to vector<16x256xf32>
    %6 = arith.addf %3, %5 : vector<16x256xf32>
    %cst_6 = arith.constant 0.000000e+00 : f32
    %7 = vector.broadcast %cst_6 : f32 to vector<16x256xf32>
    %8 = arith.maximumf %6, %7 : vector<16x256xf32>
    %c0_7 = arith.constant 0 : index
    %c0_8 = arith.constant 0 : index
    %9 = vector.load %arg5[%c0_7, %c0_8] : memref<256x128xf32, #tpu.memory_space<vmem>>, vector<256x128xf32>
    %cst_9 = arith.constant dense<0.000000e+00> : vector<16x128xf32>
    %10 = tpu.matmul %8, %9, %cst_9 {dimension_numbers = #tpu.dot_dimension_numbers<[1], [0], [0], [1], [0, 0, 1, 1], [], []>} : vector<16x256xf32>, vector<256x128xf32>, vector<16x128xf32> -> vector<16x128xf32>
    %11 = arith.addf %0, %10 : vector<16x128xf32>
    %c0_10 = arith.constant 0 : index
    %c0_11 = arith.constant 0 : index
    %12 = vector.load %arg6[%c0_10, %c0_11] : memref<1x128xf32, #tpu.memory_space<vmem>>, vector<1x128xf32>
    %13 = vector.broadcast %12 : vector<1x128xf32> to vector<16x128xf32>
    %14 = arith.addf %11, %13 : vector<16x128xf32>
    %c0_12 = arith.constant 0 : index
    %c0_13 = arith.constant 0 : index
    %15 = vector.load %arg7[%c0_12, %c0_13] : memref<16x128xf32, #tpu.memory_space<vmem>>, vector<16x128xf32>
    tpu.vector_store %arg7[%c0_12, %c0_13], %14 {strides = array<i32>} : memref<16x128xf32, #tpu.memory_space<vmem>>, vector<16x128xf32>,
    return
  }
  func.func @transform_0(%arg0: i32, %arg1: memref<1xi32, #tpu.memory_space<smem>>) -> (i32, i32) {
    %c0_i32 = arith.constant 0 : i32
    %c0_i32_0 = arith.constant 0 : i32
    return %arg0, %c0_i32 : i32, i32
  }
  func.func @transform_1(%arg0: i32, %arg1: memref<1xi32, #tpu.memory_space<smem>>) -> (i32, i32) {
    %c0_i32 = arith.constant 0 : i32
    %c0_i32_0 = arith.constant 0 : i32
    %c0_i32_1 = arith.constant 0 : i32
    return %c0_i32, %c0_i32_0 : i32, i32
  }
  func.func @transform_2(%arg0: i32, %arg1: memref<1xi32, #tpu.memory_space<smem>>) -> (i32, i32) {
    %c0_i32 = arith.constant 0 : i32
    %c0_i32_0 = arith.constant 0 : i32
    %c0_i32_1 = arith.constant 0 : i32
    return %c0_i32, %c0_i32_0 : i32, i32
  }
  func.func @transform_3(%arg0: i32, %arg1: memref<1xi32, #tpu.memory_space<smem>>) -> (i32, i32) {
    %c0_i32 = arith.constant 0 : i32
    %c0_i32_0 = arith.constant 0 : i32
    %c0_i32_1 = arith.constant 0 : i32
    return %c0_i32, %c0_i32_0 : i32, i32
  }
  func.func @transform_4(%arg0: i32, %arg1: memref<1xi32, #tpu.memory_space<smem>>) -> (i32, i32) {
    %c0_i32 = arith.constant 0 : i32
    %c0_i32_0 = arith.constant 0 : i32
    %c0_i32_1 = arith.constant 0 : i32
    return %c0_i32, %c0_i32_0 : i32, i32
  }
  func.func @transform_5(%arg0: i32, %arg1: memref<1xi32, #tpu.memory_space<smem>>) -> (i32, i32) {
    %c0_i32 = arith.constant 0 : i32
    %c0_i32_0 = arith.constant 0 : i32
    return %arg0, %c0_i32 : i32, i32
  }
}

</mosaic_0001>

<bundles_post_ra>
// kernel: tpu_custom_call.1
= control target key start
LH: loop header
LB: loop body
LE: loop exit
PB: predicated region body
PF: predicated region fallthrough
CT: control target
= control target key end

     0   :  { %12 = vsyncpa [#allocation5], 0  ;;  %s532_s0 = inlined_call_operand.<no memory space> [shape: s32[1], index: 0, kind: input, shape index: {}]   ;;  %s533_s1 = inlined_call_operand.hbm [shape: f32[16,128], index: 1, kind: input, shape index: {}]   ;;  %s534_s2 = inlined_call_operand.hbm [shape: f32[128,256], index: 2, kind: input, shape index: {}]   ;;  %s535_s3 = inlined_call_operand.vmem [shape: f32[1,256], index: 3, kind: input, shape index: {}]   ;;  %s536_s4 = inlined_call_operand.hbm [shape: f32[256,128], index: 4, kind: input, shape index: {}]   ;;  %s537_s5 = inlined_call_operand.vmem [shape: f32[1,128], index: 5, kind: input, shape index: {}]   ;;  %s538_s6 = inlined_call_operand.hbm [shape: f32[16,128], index: 6, kind: output, shape index: {}]  }
   0x1   :  { %13 = vsyncpa [#allocation8], 0 }
   0x2   :  { %14 = vsyncpa [#allocation6], 0  ;;  %s459_s0 = smov [#allocation7]  }
   0x3   :  { %s32_s21 = sshll.u32 %s459_s0, 4  ;;  %s33_s21 = int_to_ptr.vmem [resolvable:$true] %s32_s21 }
   0x4   :  { %s381_s22 = scalar_lea.vmem %s33_s21, 4096  ;;  %p386_p1 = scmp.lt.s32.totalorder %s33_s21, %s33_s21 }
   0x5   :  { %p382_p0 = scmp.ne.s32.totalorder %s33_s21, %s381_s22  ;;  %p387_p2 = scmp.lt.s32.totalorder %s381_s22, %s381_s22 }
   0x7   :  { %p388_p3 = por %p387_p2, %p386_p1 }
   0x9   :  { %p389_p4 = pnand %p388_p3, %p382_p0 }
   0xb   :  { %392 = shalt.err (!%p389_p4)
}
   0xc   :  { %s460_s23 = smov 256   ;;  %s461_s24 = smov 16  }
   0xd   :  { %38 = dma.hbm_to_vmem [thread:$0]  %s534_s2, 4096, %s33_s21, [#allocation8], %s460_s23, %s460_s23, %s461_s24  }
   0xe   :  { %s462_s27 = smov [#allocation4]  }
   0xf   :  { %s20_s28 = sshll.u32 %s462_s27, 4  ;;  %s21_s28 = int_to_ptr.vmem [resolvable:$true] %s20_s28 }
  0x10   :  { %s401_s29 = scalar_lea.vmem %s21_s28, 256  ;;  %p406_p6 = scmp.lt.s32.totalorder %s21_s28, %s21_s28 }
  0x11   :  { %p402_p5 = scmp.ne.s32.totalorder %s21_s28, %s401_s29  ;;  %p407_p7 = scmp.lt.s32.totalorder %s401_s29, %s401_s29 }
  0x13   :  { %p408_p8 = por %p407_p7, %p406_p6 }
  0x15   :  { %p409_p9 = pnand %p408_p8, %p402_p5 }
  0x17   :  { %412 = shalt.err (!%p409_p9)
}
  0x18   :  { %s463_s30 = smov 128   ;;  %s464_s7 = smov 8  }
  0x19   :  { %26 = dma.hbm_to_vmem [thread:$0]  %s533_s1, 256, %s21_s28, [#allocation5], %s463_s30, %s463_s30, %s464_s7  }
  0x1a   :  { %s465_s2 = smov [#allocation9]  }
  0x1b   :  { %s46_s10 = sshll.u32 %s465_s2, 4  ;;  %s47_s10 = int_to_ptr.vmem [resolvable:$true] %s46_s10 }
  0x1c   :  { %s421_s11 = scalar_lea.vmem %s47_s10, 4096  ;;  %p426_p11 = scmp.lt.s32.totalorder %s47_s10, %s47_s10 }
  0x1d   :  { %p422_p10 = scmp.ne.s32.totalorder %s47_s10, %s421_s11  ;;  %p427_p12 = scmp.lt.s32.totalorder %s421_s11, %s421_s11 }
  0x1f   :  { %p428_p13 = por %p427_p12, %p426_p11 }
  0x21   :  { %p429_p0 = pnand %p428_p13, %p422_p10 }
  0x23   :  { %432 = shalt.err (!%p429_p0)
}
  0x24   :  { %52 = dma.hbm_to_vmem [thread:$0]  %s536_s4, 4096, %s47_s10, [#allocation8], %s463_s30, %s463_s30, %s464_s7  }
  0x25   :  { %453 = dma.done.wait [#allocation5], 256  }
  0x26   :  { %454 = vsyncadd [#allocation5], 4294967040 }
  0x27   :  { %455 = dma.done.wait [#allocation8], 8192  }
  0x28   :  { %456 = vsyncadd [#allocation8], 4294959104  ;;  %v466_v0 = vmov 0.0   ;;  %v97_v1 = vld [vmem:[#allocation7 + $0xf8] sm:$0xff]  ;;  %v96_v2 = vld [vmem:[#allocation7 + $0xf0] sm:$0xff]  ;;  %s467_s15 = smov [#allocation10]  }
  0x29   :  { %174 = vmatprep.mubr.f32.mxu0 %v466_v0  ;;  %v95_v3 = vld [vmem:[#allocation7 + $0xe8] sm:$0xff]  ;;  %110 = vmatprep.subr.mxu0 %v97_v1  ;;  %v94_v4 = vld [vmem:[#allocation7 + $0xe0] sm:$0xff]  ;;  %v93_v5 = vld [vmem:[#allocation7 + $0xd8] sm:$0xff]  ;;  %s312_s16 = sshll.u32 %s467_s15, 4  ;;  %s313_s16 = int_to_ptr.vmem [resolvable:$true] %s312_s16 }
  0x2a   :  { %111 = vmatpush1.msra.mxu0 %v96_v2  ;;  %v92_v6 = vld [vmem:[#allocation7 + $0xd0] sm:$0xff]  ;;  %v91_v7 = vld [vmem:[#allocation7 + $0xc8] sm:$0xff]  ;;  %v90_v8 = vld [vmem:[#allocation7 + $0xc0] sm:$0xff]  ;;  %s433_s17 = scalar_lea.vmem %s313_s16, 256  ;;  %p438_p2 = scmp.lt.s32.totalorder %s313_s16, %s313_s16 }
  0x2b   :  { %112 = vmatprep.subr.mxu0 %v95_v3  ;;  %v89_v9 = vld [vmem:[#allocation7 + $0xb8] sm:$0xff]  ;;  %v88_v10 = vld [vmem:[#allocation7 + $0xb0] sm:$0xff]  ;;  %v87_v11 = vld [vmem:[#allocation7 + $0xa8] sm:$0xff]  ;;  %p434_p1 = scmp.ne.s32.totalorder %s313_s16, %s433_s17  ;;  %p439_p3 = scmp.lt.s32.totalorder %s433_s17, %s433_s17 }
  0x2c   :  { %113 = vmatpush1.msra.mxu0 %v94_v4  ;;  %v86_v12 = vld [vmem:[#allocation7 + $0xa0] sm:$0xff]  ;;  %v85_v13 = vld [vmem:[#allocation7 + $0x98] sm:$0xff]  ;;  %v84_v14 = vld [vmem:[#allocation7 + $0x90] sm:$0xff] }
  0x2d   :  { %114 = vmatprep.subr.mxu0 %v93_v5  ;;  %v222_v15 = vld [vmem:[#allocation9 + $0xf8] sm:$0xff]  ;;  %v83_v17 = vld [vmem:[#allocation7 + $0x88] sm:$0xff]  ;;  %v221_v18 = vld [vmem:[#allocation9 + $0xf0] sm:$0xff]  ;;  %p440_p4 = por %p439_p3, %p438_p2 }
  0x2e   :  { %115 = vmatpush1.msra.mxu0 %v92_v6  ;;  %v206_v16 = vld [vmem:[#allocation9 + $0x78] sm:$0xff]  ;;  %326 = vmatprep.subr.mxu1 %v222_v15  ;;  %v205_v19 = vld [vmem:[#allocation9 + $0x70] sm:$0xff]  ;;  %v82_v20 = vld [vmem:[#allocation7 + $0x80] sm:$0xff] }
  0x2f   :  { %116 = vmatprep.subr.mxu0 %v91_v7  ;;  %327 = vmatpush3.msra.mxu1 %v206_v16  ;;  %v220_v21 = vld [vmem:[#allocation9 + $0xe8] sm:$0xff]  ;;  %v81_v22 = vld [vmem:[#allocation7 + $0x78] sm:$0xff]  ;;  %v80_v24 = vld [vmem:[#allocation7 + $0x70] sm:$0xff]  ;;  %p441_p5 = pnand %p440_p4, %p434_p1 }
  0x30   :  { %117 = vmatpush1.msra.mxu0 %v90_v8  ;;  %328 = vmatprep.subr.mxu1 %v221_v18  ;;  %v204_v23 = vld [vmem:[#allocation9 + $0x68] sm:$0xff]  ;;  %v219_v25 = vld [vmem:[#allocation9 + $0xe0] sm:$0xff]  ;;  %v218_v29 = vld [vmem:[#allocation9 + $0xd8] sm:$0xff] }
  0x31   :  { %118 = vmatprep.subr.mxu0 %v89_v9  ;;  %329 = vmatpush3.msra.mxu1 %v205_v19  ;;  %v79_v26 = vld [vmem:[#allocation7 + $0x68] sm:$0xff]  ;;  %v203_v27 = vld [vmem:[#allocation9 + $0x60] sm:$0xff]  ;;  %v77_v30 = vld [vmem:[#allocation7 + $0x58] sm:$0xff] }
  0x32   :  { %119 = vmatpush1.msra.mxu0 %v88_v10  ;;  %330 = vmatprep.subr.mxu1 %v220_v21  ;;  %v78_v28 = vld [vmem:[#allocation7 + $0x60] sm:$0xff]  ;;  %v202_v31 = vld [vmem:[#allocation9 + $0x58] sm:$0xff]  ;;  %v76_v32 = vld [vmem:[#allocation7 + $0x50] sm:$0xff] }
  0x33   :  { %120 = vmatprep.subr.mxu0 %v87_v11  ;;  %331 = vmatpush3.msra.mxu1 %v204_v23  ;;  %v217_v33 = vld [vmem:[#allocation9 + $0xd0] sm:$0xff]  ;;  %v75_v34 = vld [vmem:[#allocation7 + $0x48] sm:$0xff]  ;;  %v74_v36 = vld [vmem:[#allocation7 + $0x40] sm:$0xff] }
  0x34   :  { %121 = vmatpush1.msra.mxu0 %v86_v12  ;;  %332 = vmatprep.subr.mxu1 %v219_v25  ;;  %v201_v35 = vld [vmem:[#allocation9 + $0x50] sm:$0xff]  ;;  %v216_v37 = vld [vmem:[#allocation9 + $0xc8] sm:$0xff]  ;;  %v73_v38 = vld [vmem:[#allocation7 + $0x38] sm:$0xff] }
  0x35   :  { %122 = vmatprep.subr.mxu0 %v85_v13  ;;  %333 = vmatpush3.msra.mxu1 %v203_v27  ;;  %v200_v39 = vld [vmem:[#allocation9 + $0x48] sm:$0xff]  ;;  %v72_v40 = vld [vmem:[#allocation7 + $0x30] sm:$0xff]  ;;  %v215_v41 = vld [vmem:[#allocation9 + $0xc0] sm:$0xff] }
  0x36   :  { %123 = vmatpush1.msra.mxu0 %v84_v14  ;;  %334 = vmatprep.subr.mxu1 %v218_v29  ;;  %v71_v42 = vld [vmem:[#allocation7 + $0x28] sm:$0xff]  ;;  %v199_v43 = vld [vmem:[#allocation9 + $0x40] sm:$0xff]  ;;  %v214_v45 = vld [vmem:[#allocation9 + $0xb8] sm:$0xff] }
  0x37   :  { %124 = vmatprep.subr.mxu0 %v83_v17  ;;  %335 = vmatpush3.msra.mxu1 %v202_v31  ;;  %v70_v44 = vld [vmem:[#allocation7 + $0x20] sm:$0xff]  ;;  %v69_v46 = vld [vmem:[#allocation7 + $0x18] sm:$0xff]  ;;  %v68_v48 = vld [vmem:[#allocation7 + $0x10] sm:$0xff] }
  0x38   :  { %125 = vmatpush1.msra.mxu0 %v82_v20  ;;  %336 = vmatprep.subr.mxu1 %v217_v33  ;;  %v198_v47 = vld [vmem:[#allocation9 + $0x38] sm:$0xff]  ;;  %v213_v49 = vld [vmem:[#allocation9 + $0xb0] sm:$0xff]  ;;  %v67_v50 = vld [vmem:[#allocation7 + $0x8] sm:$0xff] }
  0x39   :  { %126 = vmatprep.subr.mxu0 %v81_v22  ;;  %337 = vmatpush3.msra.mxu1 %v201_v35  ;;  %v197_v51 = vld [vmem:[#allocation9 + $0x30] sm:$0xff]  ;;  %v66_v52 = vld [vmem:[#allocation7] sm:$0xff]  ;;  %v212_v53 = vld [vmem:[#allocation9 + $0xa8] sm:$0xff] }
  0x3a   :  { %127 = vmatpush1.msra.mxu0 %v80_v24  ;;  %338 = vmatprep.subr.mxu1 %v216_v37  ;;  %v64_v54 = vld [vmem:[#allocation4] sm:$0xff]  ;;  %v196_v55 = vld [vmem:[#allocation9 + $0x28] sm:$0xff]  ;;  %v211_v56 = vld [vmem:[#allocation9 + $0xa0] sm:$0xff] }
  0x3b   :  { %128 = vmatprep.subr.mxu0 %v79_v26  ;;  %339 = vmatpush3.msra.mxu1 %v200_v39  ;;  %v195_v57 = vld [vmem:[#allocation9 + $0x20] sm:$0xff]  ;;  %v65_v58 = vld [vmem:[#allocation4 + $0x8] sm:$0xff]  ;;  %v209_v61 = vld [vmem:[#allocation9 + $0x90] sm:$0xff] }
  0x3c   :  { %129 = vmatpush1.msra.mxu0 %v78_v28  ;;  %340 = vmatprep.subr.mxu1 %v215_v41  ;;  %v210_v59 = vld [vmem:[#allocation9 + $0x98] sm:$0xff]  ;;  %v193_v62 = vld [vmem:[#allocation9 + $0x10] sm:$0xff]  ;;  %v208_v63 = vld [vmem:[#allocation9 + $0x88] sm:$0xff] }
  0x3d   :  { %130 = vmatprep.subr.mxu0 %v77_v30  ;;  %341 = vmatpush3.msra.mxu1 %v199_v43  ;;  %v194_v60 = vld [vmem:[#allocation9 + $0x18] sm:$0xff]  ;;  %v192_v1 = vld [vmem:[#allocation9 + $0x8] sm:$0xff]  ;;  %v207_v2 = vld [vmem:[#allocation9 + $0x80] sm:$0xff] }
  0x3e   :  { %131 = vmatpush1.msra.mxu0 %v76_v32  ;;  %342 = vmatprep.subr.mxu1 %v214_v45  ;;  %v191_v3 = vld [vmem:[#allocation9] sm:$0xff]  ;;  %v98_v6 = vld [vmem:[%s535_s3] sm:$0x3] }
  0x3f   :  { %132 = vmatprep.subr.mxu0 %v75_v34  ;;  %343 = vmatpush3.msra.mxu1 %v198_v47  ;;  %v325_v23 = vld [vmem:[%s537_s5] ss:$0 sm:$0xff] }
  0x40   :  { %133 = vmatpush1.msra.mxu0 %v74_v36  ;;  %344 = vmatprep.subr.mxu1 %v213_v49 }
  0x41   :  { %134 = vmatprep.subr.mxu0 %v73_v38  ;;  %345 = vmatpush3.msra.mxu1 %v197_v51 }
  0x42   :  { %135 = vmatpush1.msra.mxu0 %v72_v40  ;;  %346 = vmatprep.subr.mxu1 %v212_v53 }
  0x43   :  { %136 = vmatprep.subr.mxu0 %v71_v42  ;;  %347 = vmatpush3.msra.mxu1 %v196_v55 }
  0x44   :  { %137 = vmatpush1.msra.mxu0 %v70_v44  ;;  %348 = vmatprep.subr.mxu1 %v211_v56 }
  0x45   :  { %138 = vmatprep.subr.mxu0 %v69_v46  ;;  %349 = vmatpush3.msra.mxu1 %v195_v57 }
  0x46   :  { %139 = vmatpush1.msra.mxu0 %v68_v48  ;;  %350 = vmatprep.subr.mxu1 %v210_v59 }
  0x47   :  { %140 = vmatprep.subr.mxu0 %v67_v50  ;;  %351 = vmatpush3.msra.mxu1 %v194_v60 }
  0x48   :  { %141 = vmatpush1.msra.mxu0 %v66_v52  ;;  %352 = vmatprep.subr.mxu1 %v209_v61 }
  0x49   :  { %175 = vmatmul.mubr.f32.vlgmr.msra.gmra.mxu0 %v64_v54  ;;  %353 = vmatpush3.msra.mxu1 %v193_v62 }
  0x4a   :  { %180 = vmatprep.mubr.f32.mxu0 %v466_v0  ;;  %354 = vmatprep.subr.mxu1 %v208_v63  ;;  %v100_v0 = vlaneseq }
  0x4b   :  { %355 = vmatpush3.msra.mxu1 %v192_v1 }
  0x4c   :  { %356 = vmatprep.subr.mxu1 %v207_v2  ;;  %v101_v4 = vshrl.u32 %v100_v0, 7 }
  0x4d   :  { %181 = vmatmul.mubr.f32.gmra.mxu0 %v65_v58  ;;  %357 = vmatpush3.msra.mxu1 %v191_v3 }
  0x4e   :  { %v102_v5 = vsub.s32 0, %v101_v4  ;;  %v106_v7 = vsub.s32 1, %v101_v4 }
  0x50   :  { %v103_v8 = vrot.slane %v98_v6, %v102_v5  ;;  %v107_v9 = vrot.slane %v98_v6, %v106_v7 }
 0x109   :  { %v176_v10 = vpop.f32.mrf.mxu0 }
 0x10a   :  { %v177_v11 = vadd.f32 %v176_v10, %v103_v8 }
 0x10b   :  { %v178_v12 = vpop.f32.mrf.mxu0 }
 0x10c   :  { %v179_v13 = vadd.f32 %v178_v12, %v107_v9  ;;  %v187_v16 = vmax.f32 %v177_v11, 0.0 }
 0x10d   :  { %v182_v14 = vpop.f32.mrf.mxu0 }
 0x10e   :  { %v188_v15 = vmax.f32 %v179_v13, 0.0  ;;  %v183_v17 = vadd.f32 %v182_v14, %v103_v8 }
 0x10f   :  { %v184_v18 = vpop.f32.mrf.mxu0 }
 0x110   :  { %v185_v19 = vadd.f32 %v184_v18, %v107_v9  ;;  %294 = vmatprep.mubr.f32.mxu1 %v188_v15  ;;  %v189_v21 = vmax.f32 %v183_v17, 0.0 }
 0x111   :  { %295 = vmatmul.mubr.f32.vlgmr.msra.gmra.mxu1 %v187_v16 }
 0x112   :  { %v190_v20 = vmax.f32 %v185_v19, 0.0 }
 0x114   :  { %299 = vmatprep.mubr.f32.mxu1 %v190_v20 }
 0x115   :  { %300 = vmatmul.mubr.f32.gmra.mxu1 %v189_v21 }
 0x1d1   :  { %v358_v22 = vpop.f32.mrf.mxu1 }
 0x1d3   :  { %v359_v24 = vpop.f32.mrf.mxu1 }
 0x1d4   :  { %v360_v25 = vadd.f32 %v359_v24, %v358_v22 }
 0x1d5   :  { %v361_v26 = vpop.f32.mrf.mxu1 }
 0x1d6   :  { %v297_v27 = vadd.f32 %v360_v25, %v325_v23 }
 0x1d7   :  { %v362_v28 = vpop.f32.mrf.mxu1 }
 0x1d8   :  { %305 = vst [vmem:[#allocation10] sm:$0xff] %v297_v27  ;;  %v363_v29 = vadd.f32 %v362_v28, %v361_v26 }
 0x1da   :  { %v302_v30 = vadd.f32 %v363_v29, %v325_v23 }
 0x1dc   :  { %306 = vst [vmem:[#allocation10 + $0x8] sm:$0xff] %v302_v30 }
 0x1dd   :  { %444 = shalt.err (!%p441_p5)
}
 0x1de   :  { %318 = dma.vmem_to_hbm [thread:$0]  %s313_s16, 256, %s538_s6, [#allocation6], %s463_s30, %s463_s30, %s464_s7  }
 0x1df   :  { %457 = dma.done.wait [#allocation6], 256  }
 0x1e0   :  { %458 = vsyncadd [#allocation6], 4294967040 }
 0x1e1   :  { %322 = vsyncpa [#allocation5], 1 }
 0x1e2   :  { %323 = vsyncpa [#allocation8], 1 }
 0x1e3   :  { %324 = vsyncpa [#allocation6], 1 }

// kernel: tpu_custom_call.1
= control target key start
LH: loop header
LB: loop body
LE: loop exit
PB: predicated region body
PF: predicated region fallthrough
CT: control target
= control target key end

     0   :  { %12 = vsyncpa [#allocation5], 0  ;;  %s532_s0 = inlined_call_operand.<no memory space> [shape: s32[1], index: 0, kind: input, shape index: {}]   ;;  %s533_s1 = inlined_call_operand.hbm [shape: f32[16,128], index: 1, kind: input, shape index: {}]   ;;  %s534_s2 = inlined_call_operand.hbm [shape: f32[128,256], index: 2, kind: input, shape index: {}]   ;;  %s535_s3 = inlined_call_operand.vmem [shape: f32[1,256], index: 3, kind: input, shape index: {}]   ;;  %s536_s4 = inlined_call_operand.hbm [shape: f32[256,128], index: 4, kind: input, shape index: {}]   ;;  %s537_s5 = inlined_call_operand.vmem [shape: f32[1,128], index: 5, kind: input, shape index: {}]   ;;  %s538_s6 = inlined_call_operand.hbm [shape: f32[16,128], index: 6, kind: output, shape index: {}]  }
   0x1   :  { %13 = vsyncpa [#allocation8], 0 }
   0x2   :  { %14 = vsyncpa [#allocation6], 0  ;;  %s459_s0 = smov [#allocation7]  }
   0x3   :  { %s32_s21 = sshll.u32 %s459_s0, 4  ;;  %s33_s21 = int_to_ptr.vmem [resolvable:$true] %s32_s21 }
   0x4   :  { %s381_s22 = scalar_lea.vmem %s33_s21, 4096  ;;  %p386_p1 = scmp.lt.s32.totalorder %s33_s21, %s33_s21 }
   0x5   :  { %p382_p0 = scmp.ne.s32.totalorder %s33_s21, %s381_s22  ;;  %p387_p2 = scmp.lt.s32.totalorder %s381_s22, %s381_s22 }
   0x7   :  { %p388_p3 = por %p387_p2, %p386_p1 }
   0x9   :  { %p389_p4 = pnand %p388_p3, %p382_p0 }
   0xb   :  { %392 = shalt.err (!%p389_p4)
}
   0xc   :  { %s460_s23 = smov 256   ;;  %s461_s24 = smov 16  }
   0xd   :  { %38 = dma.hbm_to_vmem [thread:$0]  %s534_s2, 4096, %s33_s21, [#allocation8], %s460_s23, %s460_s23, %s461_s24  }
   0xe   :  { %s462_s27 = smov [#allocation4]  }
   0xf   :  { %s20_s28 = sshll.u32 %s462_s27, 4  ;;  %s21_s28 = int_to_ptr.vmem [resolvable:$true] %s20_s28 }
  0x10   :  { %s401_s29 = scalar_lea.vmem %s21_s28, 256  ;;  %p406_p6 = scmp.lt.s32.totalorder %s21_s28, %s21_s28 }
  0x11   :  { %p402_p5 = scmp.ne.s32.totalorder %s21_s28, %s401_s29  ;;  %p407_p7 = scmp.lt.s32.totalorder %s401_s29, %s401_s29 }
  0x13   :  { %p408_p8 = por %p407_p7, %p406_p6 }
  0x15   :  { %p409_p9 = pnand %p408_p8, %p402_p5 }
  0x17   :  { %412 = shalt.err (!%p409_p9)
}
  0x18   :  { %s463_s30 = smov 128   ;;  %s464_s7 = smov 8  }
  0x19   :  { %26 = dma.hbm_to_vmem [thread:$0]  %s533_s1, 256, %s21_s28, [#allocation5], %s463_s30, %s463_s30, %s464_s7  }
  0x1a   :  { %s465_s2 = smov [#allocation9]  }
  0x1b   :  { %s46_s10 = sshll.u32 %s465_s2, 4  ;;  %s47_s10 = int_to_ptr.vmem [resolvable:$true] %s46_s10 }
  0x1c   :  { %s421_s11 = scalar_lea.vmem %s47_s10, 4096  ;;  %p426_p11 = scmp.lt.s32.totalorder %s47_s10, %s47_s10 }
  0x1d   :  { %p422_p10 = scmp.ne.s32.totalorder %s47_s10, %s421_s11  ;;  %p427_p12 = scmp.lt.s32.totalorder %s421_s11, %s421_s11 }
  0x1f   :  { %p428_p13 = por %p427_p12, %p426_p11 }
  0x21   :  { %p429_p0 = pnand %p428_p13, %p422_p10 }
  0x23   :  { %432 = shalt.err (!%p429_p0)
}
  0x24   :  { %52 = dma.hbm_to_vmem [thread:$0]  %s536_s4, 4096, %s47_s10, [#allocation8], %s463_s30, %s463_s30, %s464_s7  }
  0x25   :  { %453 = dma.done.wait [#allocation5], 256  }
  0x26   :  { %454 = vsyncadd [#allocation5], 4294967040 }
  0x27   :  { %455 = dma.done.wait [#allocation8], 8192  }
  0x28   :  { %456 = vsyncadd [#allocation8], 4294959104  ;;  %v466_v0 = vmov 0.0   ;;  %v97_v1 = vld [vmem:[#allocation7 + $0xf8] sm:$0xff]  ;;  %v96_v2 = vld [vmem:[#allocation7 + $0xf0] sm:$0xff]  ;;  %s467_s15 = smov [#allocation10]  }
  0x29   :  { %174 = vmatprep.mubr.f32.mxu0 %v466_v0  ;;  %v95_v3 = vld [vmem:[#allocation7 + $0xe8] sm:$0xff]  ;;  %110 = vmatprep.subr.mxu0 %v97_v1  ;;  %v94_v4 = vld [vmem:[#allocation7 + $0xe0] sm:$0xff]  ;;  %v93_v5 = vld [vmem:[#allocation7 + $0xd8] sm:$0xff]  ;;  %s312_s16 = sshll.u32 %s467_s15, 4  ;;  %s313_s16 = int_to_ptr.vmem [resolvable:$true] %s312_s16 }
  0x2a   :  { %111 = vmatpush1.msra.mxu0 %v96_v2  ;;  %v92_v6 = vld [vmem:[#allocation7 + $0xd0] sm:$0xff]  ;;  %v91_v7 = vld [vmem:[#allocation7 + $0xc8] sm:$0xff]  ;;  %v90_v8 = vld [vmem:[#allocation7 + $0xc0] sm:$0xff]  ;;  %s433_s17 = scalar_lea.vmem %s313_s16, 256  ;;  %p438_p2 = scmp.lt.s32.totalorder %s313_s16, %s313_s16 }
  0x2b   :  { %112 = vmatprep.subr.mxu0 %v95_v3  ;;  %v89_v9 = vld [vmem:[#allocation7 + $0xb8] sm:$0xff]  ;;  %v88_v10 = vld [vmem:[#allocation7 + $0xb0] sm:$0xff]  ;;  %v87_v11 = vld [vmem:[#allocation7 + $0xa8] sm:$0xff]  ;;  %p434_p1 = scmp.ne.s32.totalorder %s313_s16, %s433_s17  ;;  %p439_p3 = scmp.lt.s32.totalorder %s433_s17, %s433_s17 }
  0x2c   :  { %113 = vmatpush1.msra.mxu0 %v94_v4  ;;  %v86_v12 = vld [vmem:[#allocation7 + $0xa0] sm:$0xff]  ;;  %v85_v13 = vld [vmem:[#allocation7 + $0x98] sm:$0xff]  ;;  %v84_v14 = vld [vmem:[#allocation7 + $0x90] sm:$0xff] }
  0x2d   :  { %114 = vmatprep.subr.mxu0 %v93_v5  ;;  %v222_v15 = vld [vmem:[#allocation9 + $0xf8] sm:$0xff]  ;;  %v83_v17 = vld [vmem:[#allocation7 + $0x88] sm:$0xff]  ;;  %v221_v18 = vld [vmem:[#allocation9 + $0xf0] sm:$0xff]  ;;  %p440_p4 = por %p439_p3, %p438_p2 }
  0x2e   :  { %115 = vmatpush1.msra.mxu0 %v92_v6  ;;  %v206_v16 = vld [vmem:[#allocation9 + $0x78] sm:$0xff]  ;;  %326 = vmatprep.subr.mxu1 %v222_v15  ;;  %v205_v19 = vld [vmem:[#allocation9 + $0x70] sm:$0xff]  ;;  %v82_v20 = vld [vmem:[#allocation7 + $0x80] sm:$0xff] }
  0x2f   :  { %116 = vmatprep.subr.mxu0 %v91_v7  ;;  %327 = vmatpush3.msra.mxu1 %v206_v16  ;;  %v220_v21 = vld [vmem:[#allocation9 + $0xe8] sm:$0xff]  ;;  %v81_v22 = vld [vmem:[#allocation7 + $0x78] sm:$0xff]  ;;  %v80_v24 = vld [vmem:[#allocation7 + $0x70] sm:$0xff]  ;;  %p441_p5 = pnand %p440_p4, %p434_p1 }
  0x30   :  { %117 = vmatpush1.msra.mxu0 %v90_v8  ;;  %328 = vmatprep.subr.mxu1 %v221_v18  ;;  %v204_v23 = vld [vmem:[#allocation9 + $0x68] sm:$0xff]  ;;  %v219_v25 = vld [vmem:[#allocation9 + $0xe0] sm:$0xff]  ;;  %v218_v29 = vld [vmem:[#allocation9 + $0xd8] sm:$0xff] }
  0x31   :  { %118 = vmatprep.subr.mxu0 %v89_v9  ;;  %329 = vmatpush3.msra.mxu1 %v205_v19  ;;  %v79_v26 = vld [vmem:[#allocation7 + $0x68] sm:$0xff]  ;;  %v203_v27 = vld [vmem:[#allocation9 + $0x60] sm:$0xff]  ;;  %v77_v30 = vld [vmem:[#allocation7 + $0x58] sm:$0xff] }
  0x32   :  { %119 = vmatpush1.msra.mxu0 %v88_v10  ;;  %330 = vmatprep.subr.mxu1 %v220_v21  ;;  %v78_v28 = vld [vmem:[#allocation7 + $0x60] sm:$0xff]  ;;  %v202_v31 = vld [vmem:[#allocation9 + $0x58] sm:$0xff]  ;;  %v76_v32 = vld [vmem:[#allocation7 + $0x50] sm:$0xff] }
  0x33   :  { %120 = vmatprep.subr.mxu0 %v87_v11  ;;  %331 = vmatpush3.msra.mxu1 %v204_v23  ;;  %v217_v33 = vld [vmem:[#allocation9 + $0xd0] sm:$0xff]  ;;  %v75_v34 = vld [vmem:[#allocation7 + $0x48] sm:$0xff]  ;;  %v74_v36 = vld [vmem:[#allocation7 + $0x40] sm:$0xff] }
  0x34   :  { %121 = vmatpush1.msra.mxu0 %v86_v12  ;;  %332 = vmatprep.subr.mxu1 %v219_v25  ;;  %v201_v35 = vld [vmem:[#allocation9 + $0x50] sm:$0xff]  ;;  %v216_v37 = vld [vmem:[#allocation9 + $0xc8] sm:$0xff]  ;;  %v73_v38 = vld [vmem:[#allocation7 + $0x38] sm:$0xff] }
  0x35   :  { %122 = vmatprep.subr.mxu0 %v85_v13  ;;  %333 = vmatpush3.msra.mxu1 %v203_v27  ;;  %v200_v39 = vld [vmem:[#allocation9 + $0x48] sm:$0xff]  ;;  %v72_v40 = vld [vmem:[#allocation7 + $0x30] sm:$0xff]  ;;  %v215_v41 = vld [vmem:[#allocation9 + $0xc0] sm:$0xff] }
  0x36   :  { %123 = vmatpush1.msra.mxu0 %v84_v14  ;;  %334 = vmatprep.subr.mxu1 %v218_v29  ;;  %v71_v42 = vld [vmem:[#allocation7 + $0x28] sm:$0xff]  ;;  %v199_v43 = vld [vmem:[#allocation9 + $0x40] sm:$0xff]  ;;  %v214_v45 = vld [vmem:[#allocation9 + $0xb8] sm:$0xff] }
  0x37   :  { %124 = vmatprep.subr.mxu0 %v83_v17  ;;  %335 = vmatpush3.msra.mxu1 %v202_v31  ;;  %v70_v44 = vld [vmem:[#allocation7 + $0x20] sm:$0xff]  ;;  %v69_v46 = vld [vmem:[#allocation7 + $0x18] sm:$0xff]  ;;  %v68_v48 = vld [vmem:[#allocation7 + $0x10] sm:$0xff] }
  0x38   :  { %125 = vmatpush1.msra.mxu0 %v82_v20  ;;  %336 = vmatprep.subr.mxu1 %v217_v33  ;;  %v198_v47 = vld [vmem:[#allocation9 + $0x38] sm:$0xff]  ;;  %v213_v49 = vld [vmem:[#allocation9 + $0xb0] sm:$0xff]  ;;  %v67_v50 = vld [vmem:[#allocation7 + $0x8] sm:$0xff] }
  0x39   :  { %126 = vmatprep.subr.mxu0 %v81_v22  ;;  %337 = vmatpush3.msra.mxu1 %v201_v35  ;;  %v197_v51 = vld [vmem:[#allocation9 + $0x30] sm:$0xff]  ;;  %v66_v52 = vld [vmem:[#allocation7] sm:$0xff]  ;;  %v212_v53 = vld [vmem:[#allocation9 + $0xa8] sm:$0xff] }
  0x3a   :  { %127 = vmatpush1.msra.mxu0 %v80_v24  ;;  %338 = vmatprep.subr.mxu1 %v216_v37  ;;  %v64_v54 = vld [vmem:[#allocation4] sm:$0xff]  ;;  %v196_v55 = vld [vmem:[#allocation9 + $0x28] sm:$0xff]  ;;  %v211_v56 = vld [vmem:[#allocation9 + $0xa0] sm:$0xff] }
  0x3b   :  { %128 = vmatprep.subr.mxu0 %v79_v26  ;;  %339 = vmatpush3.msra.mxu1 %v200_v39  ;;  %v195_v57 = vld [vmem:[#allocation9 + $0x20] sm:$0xff]  ;;  %v65_v58 = vld [vmem:[#allocation4 + $0x8] sm:$0xff]  ;;  %v209_v61 = vld [vmem:[#allocation9 + $0x90] sm:$0xff] }
  0x3c   :  { %129 = vmatpush1.msra.mxu0 %v78_v28  ;;  %340 = vmatprep.subr.mxu1 %v215_v41  ;;  %v210_v59 = vld [vmem:[#allocation9 + $0x98] sm:$0xff]  ;;  %v193_v62 = vld [vmem:[#allocation9 + $0x10] sm:$0xff]  ;;  %v208_v63 = vld [vmem:[#allocation9 + $0x88] sm:$0xff] }
  0x3d   :  { %130 = vmatprep.subr.mxu0 %v77_v30  ;;  %341 = vmatpush3.msra.mxu1 %v199_v43  ;;  %v194_v60 = vld [vmem:[#allocation9 + $0x18] sm:$0xff]  ;;  %v192_v1 = vld [vmem:[#allocation9 + $0x8] sm:$0xff]  ;;  %v207_v2 = vld [vmem:[#allocation9 + $0x80] sm:$0xff] }
  0x3e   :  { %131 = vmatpush1.msra.mxu0 %v76_v32  ;;  %342 = vmatprep.subr.mxu1 %v214_v45  ;;  %v191_v3 = vld [vmem:[#allocation9] sm:$0xff]  ;;  %v98_v6 = vld [vmem:[%s535_s3] sm:$0x3] }
  0x3f   :  { %132 = vmatprep.subr.mxu0 %v75_v34  ;;  %343 = vmatpush3.msra.mxu1 %v198_v47  ;;  %v325_v23 = vld [vmem:[%s537_s5] ss:$0 sm:$0xff] }
  0x40   :  { %133 = vmatpush1.msra.mxu0 %v74_v36  ;;  %344 = vmatprep.subr.mxu1 %v213_v49 }
  0x41   :  { %134 = vmatprep.subr.mxu0 %v73_v38  ;;  %345 = vmatpush3.msra.mxu1 %v197_v51 }
  0x42   :  { %135 = vmatpush1.msra.mxu0 %v72_v40  ;;  %346 = vmatprep.subr.mxu1 %v212_v53 }
  0x43   :  { %136 = vmatprep.subr.mxu0 %v71_v42  ;;  %347 = vmatpush3.msra.mxu1 %v196_v55 }
  0x44   :  { %137 = vmatpush1.msra.mxu0 %v70_v44  ;;  %348 = vmatprep.subr.mxu1 %v211_v56 }
  0x45   :  { %138 = vmatprep.subr.mxu0 %v69_v46  ;;  %349 = vmatpush3.msra.mxu1 %v195_v57 }
  0x46   :  { %139 = vmatpush1.msra.mxu0 %v68_v48  ;;  %350 = vmatprep.subr.mxu1 %v210_v59 }
  0x47   :  { %140 = vmatprep.subr.mxu0 %v67_v50  ;;  %351 = vmatpush3.msra.mxu1 %v194_v60 }
  0x48   :  { %141 = vmatpush1.msra.mxu0 %v66_v52  ;;  %352 = vmatprep.subr.mxu1 %v209_v61 }
  0x49   :  { %175 = vmatmul.mubr.f32.vlgmr.msra.gmra.mxu0 %v64_v54  ;;  %353 = vmatpush3.msra.mxu1 %v193_v62 }
  0x4a   :  { %180 = vmatprep.mubr.f32.mxu0 %v466_v0  ;;  %354 = vmatprep.subr.mxu1 %v208_v63  ;;  %v100_v0 = vlaneseq }
  0x4b   :  { %355 = vmatpush3.msra.mxu1 %v192_v1 }
  0x4c   :  { %356 = vmatprep.subr.mxu1 %v207_v2  ;;  %v101_v4 = vshrl.u32 %v100_v0, 7 }
  0x4d   :  { %181 = vmatmul.mubr.f32.gmra.mxu0 %v65_v58  ;;  %357 = vmatpush3.msra.mxu1 %v191_v3 }
  0x4e   :  { %v102_v5 = vsub.s32 0, %v101_v4  ;;  %v106_v7 = vsub.s32 1, %v101_v4 }
  0x50   :  { %v103_v8 = vrot.slane %v98_v6, %v102_v5  ;;  %v107_v9 = vrot.slane %v98_v6, %v106_v7 }
 0x109   :  { %v176_v10 = vpop.f32.mrf.mxu0 }
 0x10a   :  { %v177_v11 = vadd.f32 %v176_v10, %v103_v8 }
 0x10b   :  { %v178_v12 = vpop.f32.mrf.mxu0 }
 0x10c   :  { %v179_v13 = vadd.f32 %v178_v12, %v107_v9  ;;  %v187_v16 = vmax.f32 %v177_v11, 0.0 }
 0x10d   :  { %v182_v14 = vpop.f32.mrf.mxu0 }
 0x10e   :  { %v188_v15 = vmax.f32 %v179_v13, 0.0  ;;  %v183_v17 = vadd.f32 %v182_v14, %v103_v8 }
 0x10f   :  { %v184_v18 = vpop.f32.mrf.mxu0 }
 0x110   :  { %v185_v19 = vadd.f32 %v184_v18, %v107_v9  ;;  %294 = vmatprep.mubr.f32.mxu1 %v188_v15  ;;  %v189_v21 = vmax.f32 %v183_v17, 0.0 }
 0x111   :  { %295 = vmatmul.mubr.f32.vlgmr.msra.gmra.mxu1 %v187_v16 }
 0x112   :  { %v190_v20 = vmax.f32 %v185_v19, 0.0 }
 0x114   :  { %299 = vmatprep.mubr.f32.mxu1 %v190_v20 }
 0x115   :  { %300 = vmatmul.mubr.f32.gmra.mxu1 %v189_v21 }
 0x1d1   :  { %v358_v22 = vpop.f32.mrf.mxu1 }
 0x1d3   :  { %v359_v24 = vpop.f32.mrf.mxu1 }
 0x1d4   :  { %v360_v25 = vadd.f32 %v359_v24, %v358_v22 }
 0x1d5   :  { %v361_v26 = vpop.f32.mrf.mxu1 }
 0x1d6   :  { %v297_v27 = vadd.f32 %v360_v25, %v325_v23 }
 0x1d7   :  { %v362_v28 = vpop.f32.mrf.mxu1 }
 0x1d8   :  { %305 = vst [vmem:[#allocation10] sm:$0xff] %v297_v27  ;;  %v363_v29 = vadd.f32 %v362_v28, %v361_v26 }
 0x1da   :  { %v302_v30 = vadd.f32 %v363_v29, %v325_v23 }
 0x1dc   :  { %306 = vst [vmem:[#allocation10 + $0x8] sm:$0xff] %v302_v30 }
 0x1dd   :  { %444 = shalt.err (!%p441_p5)
}
 0x1de   :  { %318 = dma.vmem_to_hbm [thread:$0]  %s313_s16, 256, %s538_s6, [#allocation6], %s463_s30, %s463_s30, %s464_s7  }
 0x1df   :  { %457 = dma.done.wait [#allocation6], 256  }
 0x1e0   :  { %458 = vsyncadd [#allocation6], 4294967040 }
 0x1e1   :  { %322 = vsyncpa [#allocation5], 1 }
 0x1e2   :  { %323 = vsyncpa [#allocation8], 1 }
 0x1e3   :  { %324 = vsyncpa [#allocation6], 1 }

</bundles_post_ra>
